<compile_context>
chip_gen: v7x
topology: tpu7x:2x2x1
jax: 0.10.0
libtpu: 0.0.40
codegen_flags: <defaults>
</compile_context>

<pallas_src>
import functools

import jax
import jax.numpy as jnp
from jax.experimental import pallas as pl
from jax.experimental.pallas import tpu as pltpu


_VMEM_LIMIT_BYTES = 48 * 1024 * 1024   # < v7x's 64 MiB physical, raises v5e's 16 MiB default
_SINGLE_K_MAX = 2048                   # full-K single MXU block up to this contraction size


# ---------------------------------------------------------------------------
# Tiling helpers
# ---------------------------------------------------------------------------

def _round_up(x, m):
    return ((x + m - 1) // m) * m


def _pad2(a, rows, cols):
    r, c = a.shape
    if r == rows and c == cols:
        return a
    return jnp.pad(a, ((0, rows - r), (0, cols - c)))


def _pick_tile_m(m, target=512):
    """Row tile (multiple of 8); prefer a divisor of the padded row count."""
    mr = _round_up(m, 8)
    if mr <= target:
        return mr, mr
    for t in range(target, 63, -8):
        if mr % t == 0:
            return t, mr
    return target, _round_up(mr, target)


def _pick_tile_n(n, target=256):
    """Lane-dense column tile (multiple of 128)."""
    np_ = _round_up(n, 128)
    if np_ <= target:
        return np_, np_
    if np_ % target == 0:
        return target, np_
    return 128, np_


def _pick_tile_k(k):
    kp = _round_up(k, 8)
    if kp <= _SINGLE_K_MAX:
        return kp, kp                  # single full-K block, no scratch needed
    for t in (1024, 512, 384, 256, 128):
        if kp % t == 0:
            return t, kp
    return 512, _round_up(kp, 512)


# ---------------------------------------------------------------------------
# Pallas kernels: conv-GEMM with fused BN-statistics epilogue
# ---------------------------------------------------------------------------
# Stats output layout: (num_row_tiles, 8, Np) f32.  Row 0 of the 8-sublane
# block holds the per-column sum, row 1 the per-column sum-of-squares for that
# row tile; the (8, tn) block keeps the store sublane-aligned.

def _mm_bn_single_kernel(x_ref, w_ref, y_ref, stat_ref):
    acc = jnp.dot(x_ref[...], w_ref[...], preferred_element_type=jnp.float32)
    y_ref[...] = acc.astype(y_ref.dtype)
    csum = jnp.sum(acc, axis=0, keepdims=True)
    csq = jnp.sum(acc * acc, axis=0, keepdims=True)
    pad = jnp.zeros((6, csum.shape[1]), jnp.float32)
    stat_ref[0] = jnp.concatenate([csum, csq, pad], axis=0)


def _mm_bn_multi_kernel(x_ref, w_ref, y_ref, stat_ref, acc_ref):
    # All grid queries at the top level (never inside pl.when bodies).
    k = pl.program_id(2)
    nk = pl.num_programs(2)

    @pl.when(k == 0)
    def _():
        acc_ref[...] = jnp.zeros_like(acc_ref)

    acc_ref[...] += jnp.dot(x_ref[...], w_ref[...],
                            preferred_element_type=jnp.float32)

    @pl.when(k == nk - 1)
    def _():
        acc = acc_ref[...]
        y_ref[...] = acc.astype(y_ref.dtype)
        csum = jnp.sum(acc, axis=0, keepdims=True)
        csq = jnp.sum(acc * acc, axis=0, keepdims=True)
        pad = jnp.zeros((6, csum.shape[1]), jnp.float32)
        stat_ref[0] = jnp.concatenate([csum, csq, pad], axis=0)


def pallas_matmul_bn(x, w):
    """(M,K)@(K,N) -> y:(Mp,Np) bf16 plus per-column sum / sum-sq (1,Np) f32.
    Padded rows/columns are zero so the statistics of real columns are exact."""
    m, k = x.shape
    _, n = w.shape
    tm, mp = _pick_tile_m(m)
    tn, np_ = _pick_tile_n(n)
    tk, kp = _pick_tile_k(k)
    gm, gn, gk = mp // tm, np_ // tn, kp // tk
    xp = _pad2(x.astype(jnp.bfloat16), mp, kp)
    wp = _pad2(w.astype(jnp.bfloat16), kp, np_)
    out_shape = (jax.ShapeDtypeStruct((mp, np_), jnp.bfloat16),
                 jax.ShapeDtypeStruct((gm, 8, np_), jnp.float32))
    if gk == 1:
        y, stats = pl.pallas_call(
            _mm_bn_single_kernel,
            out_shape=out_shape,
            grid=(gm, gn),
            in_specs=[pl.BlockSpec((tm, kp), lambda i, j: (i, 0)),
                      pl.BlockSpec((kp, tn), lambda i, j: (0, j))],
            out_specs=(pl.BlockSpec((tm, tn), lambda i, j: (i, j)),
                       pl.BlockSpec((1, 8, tn), lambda i, j: (i, 0, j))),
            compiler_params=pltpu.CompilerParams(
                dimension_semantics=("parallel", "parallel"),
                vmem_limit_bytes=_VMEM_LIMIT_BYTES),
        )(xp, wp)
    else:
        y, stats = pl.pallas_call(
            _mm_bn_multi_kernel,
            out_shape=out_shape,
            grid=(gm, gn, gk),
            in_specs=[pl.BlockSpec((tm, tk), lambda i, j, kk: (i, kk)),
                      pl.BlockSpec((tk, tn), lambda i, j, kk: (kk, j))],
            out_specs=(pl.BlockSpec((tm, tn), lambda i, j, kk: (i, j)),
                       pl.BlockSpec((1, 8, tn), lambda i, j, kk: (i, 0, j))),
            scratch_shapes=[pltpu.VMEM((tm, tn), jnp.float32)],
            compiler_params=pltpu.CompilerParams(
                dimension_semantics=("parallel", "parallel", "arbitrary"),
                vmem_limit_bytes=_VMEM_LIMIT_BYTES),
        )(xp, wp)
    col_sum = jnp.sum(stats[:, 0:1, :], axis=0)   # (1, Np)
    col_sq = jnp.sum(stats[:, 1:2, :], axis=0)    # (1, Np)
    return y, col_sum, col_sq


# ---------------------------------------------------------------------------
# Pallas kernels: plain matmul + bias (attention projections)
# ---------------------------------------------------------------------------

def _mm_bias_single_kernel(x_ref, w_ref, b_ref, y_ref):
    y_ref[...] = (jnp.dot(x_ref[...], w_ref[...],
                          preferred_element_type=jnp.float32) + b_ref[...])


def _mm_bias_multi_kernel(x_ref, w_ref, b_ref, y_ref, acc_ref):
    k = pl.program_id(2)
    nk = pl.num_programs(2)

    @pl.when(k == 0)
    def _():
        acc_ref[...] = jnp.zeros_like(acc_ref)

    acc_ref[...] += jnp.dot(x_ref[...], w_ref[...],
                            preferred_element_type=jnp.float32)

    @pl.when(k == nk - 1)
    def _():
        y_ref[...] = acc_ref[...] + b_ref[...]


def pallas_matmul_bias(x, w, b):
    """(M,K) @ (K,N) + (1,N) -> (M,N) f32; bf16 MXU operands, tiled."""
    m, k = x.shape
    _, n = w.shape
    tm, mp = _pick_tile_m(m)
    tn, np_ = _pick_tile_n(n)
    tk, kp = _pick_tile_k(k)
    gm, gn, gk = mp // tm, np_ // tn, kp // tk
    xp = _pad2(x.astype(jnp.bfloat16), mp, kp)
    wp = _pad2(w.astype(jnp.bfloat16), kp, np_)
    bp = _pad2(b.astype(jnp.float32), 1, np_)
    if gk == 1:
        y = pl.pallas_call(
            _mm_bias_single_kernel,
            out_shape=jax.ShapeDtypeStruct((mp, np_), jnp.float32),
            grid=(gm, gn),
            in_specs=[pl.BlockSpec((tm, kp), lambda i, j: (i, 0)),
                      pl.BlockSpec((kp, tn), lambda i, j: (0, j)),
                      pl.BlockSpec((1, tn), lambda i, j: (0, j))],
            out_specs=pl.BlockSpec((tm, tn), lambda i, j: (i, j)),
            compiler_params=pltpu.CompilerParams(
                dimension_semantics=("parallel", "parallel"),
                vmem_limit_bytes=_VMEM_LIMIT_BYTES),
        )(xp, wp, bp)
    else:
        y = pl.pallas_call(
            _mm_bias_multi_kernel,
            out_shape=jax.ShapeDtypeStruct((mp, np_), jnp.float32),
            grid=(gm, gn, gk),
            in_specs=[pl.BlockSpec((tm, tk), lambda i, j, kk: (i, kk)),
                      pl.BlockSpec((tk, tn), lambda i, j, kk: (kk, j)),
                      pl.BlockSpec((1, tn), lambda i, j, kk: (0, j))],
            out_specs=pl.BlockSpec((tm, tn), lambda i, j, kk: (i, j)),
            scratch_shapes=[pltpu.VMEM((tm, tn), jnp.float32)],
            compiler_params=pltpu.CompilerParams(
                dimension_semantics=("parallel", "parallel", "arbitrary"),
                vmem_limit_bytes=_VMEM_LIMIT_BYTES),
        )(xp, wp, bp)
    return y[:m, :n]


# ---------------------------------------------------------------------------
# Pallas kernels: BN scale/shift (+residual) (+ReLU), bf16 in / bf16 out
# ---------------------------------------------------------------------------

def _affine_kernel(x_ref, s_ref, b_ref, o_ref, *, relu):
    y = x_ref[...].astype(jnp.float32) * s_ref[...] + b_ref[...]
    if relu:
        y = jnp.maximum(y, 0.0)
    o_ref[...] = y.astype(o_ref.dtype)


def pallas_affine(x, scale, shift, relu):
    m, c = x.shape
    tm, mp = _pick_tile_m(m, target=1024)
    xp = _pad2(x, mp, c)
    y = pl.pallas_call(
        functools.partial(_affine_kernel, relu=relu),
        out_shape=jax.ShapeDtypeStruct((mp, c), jnp.bfloat16),
        grid=(mp // tm,),
        in_specs=[pl.BlockSpec((tm, c), lambda i: (i, 0)),
                  pl.BlockSpec((1, c), lambda i: (0, 0)),
                  pl.BlockSpec((1, c), lambda i: (0, 0))],
        out_specs=pl.BlockSpec((tm, c), lambda i: (i, 0)),
        compiler_params=pltpu.CompilerParams(
            dimension_semantics=("parallel",),
            vmem_limit_bytes=_VMEM_LIMIT_BYTES),
    )(xp, scale, shift)
    return y if mp == m else y[:m]


def _affine_add_relu_kernel(x_ref, s_ref, b_ref, r_ref, o_ref):
    y = (x_ref[...].astype(jnp.float32) * s_ref[...] + b_ref[...]
         + r_ref[...].astype(jnp.float32))
    o_ref[...] = jnp.maximum(y, 0.0).astype(o_ref.dtype)


def pallas_affine_add_relu(x, scale, shift, res):
    m, c = x.shape
    tm, mp = _pick_tile_m(m, target=1024)
    xp = _pad2(x, mp, c)
    rp = _pad2(res, mp, c)
    y = pl.pallas_call(
        _affine_add_relu_kernel,
        out_shape=jax.ShapeDtypeStruct((mp, c), jnp.bfloat16),
        grid=(mp // tm,),
        in_specs=[pl.BlockSpec((tm, c), lambda i: (i, 0)),
                  pl.BlockSpec((1, c), lambda i: (0, 0)),
                  pl.BlockSpec((1, c), lambda i: (0, 0)),
                  pl.BlockSpec((tm, c), lambda i: (i, 0))],
        out_specs=pl.BlockSpec((tm, c), lambda i: (i, 0)),
        compiler_params=pltpu.CompilerParams(
            dimension_semantics=("parallel",),
            vmem_limit_bytes=_VMEM_LIMIT_BYTES),
    )(xp, scale, shift, rp)
    return y if mp == m else y[:m]


# ---------------------------------------------------------------------------
# Pallas kernel: per-(batch x head) softmax attention, 128-lane-padded heads
# ---------------------------------------------------------------------------

def _attn_head_kernel(q_ref, k_ref, v_ref, o_ref, *, scale):
    q = q_ref[0]                                   # (L, dpad) bf16
    k = k_ref[0]
    v = v_ref[0]
    s = jax.lax.dot_general(q, k, (((1,), (1,)), ((), ())),
                            preferred_element_type=jnp.float32) * scale
    s = s - jnp.max(s, axis=-1, keepdims=True)
    p = jnp.exp(s)
    p = p / jnp.sum(p, axis=-1, keepdims=True)
    o_ref[0] = jnp.dot(p.astype(v.dtype), v,
                       preferred_element_type=jnp.float32).astype(o_ref.dtype)


def pallas_attention_heads(q, k, v, scale):
    """q,k,v: (N*H, L, dpad) bf16 -> (N*H, L, dpad) bf16; one head per step."""
    nh, L, dpad = q.shape
    spec = pl.BlockSpec((1, L, dpad), lambda b: (b, 0, 0))
    return pl.pallas_call(
        functools.partial(_attn_head_kernel, scale=scale),
        out_shape=jax.ShapeDtypeStruct((nh, L, dpad), jnp.bfloat16),
        grid=(nh,),
        in_specs=[spec, spec, spec],
        out_specs=spec,
        compiler_params=pltpu.CompilerParams(
            dimension_semantics=("parallel",),
            vmem_limit_bytes=_VMEM_LIMIT_BYTES),
    )(q, k, v)


# ---------------------------------------------------------------------------
# Glue: conv+BN wrapper, pooling, bilinear resize
# ---------------------------------------------------------------------------

def batchnorm_apply(y_pad, col_sum, col_sq, gamma, beta, m_true, c_true,
                    *, relu, residual=None, eps=1e-5):
    """Training-mode BN (batch statistics, biased variance) on the padded
    bf16 conv output; fused optional residual add + ReLU."""
    np_ = y_pad.shape[1]
    mean = col_sum / float(m_true)
    var = jnp.maximum(col_sq / float(m_true) - mean * mean, 0.0)
    g = gamma if gamma.shape[0] == np_ else jnp.pad(gamma, (0, np_ - c_true))
    b = beta if beta.shape[0] == np_ else jnp.pad(beta, (0, np_ - c_true))
    scale = g[None, :] / jnp.sqrt(var + eps)
    shift = b[None, :] - mean * scale
    if residual is not None:
        res = _pad2(residual, y_pad.shape[0], np_)
        out = pallas_affine_add_relu(y_pad, scale, shift, res)
    else:
        out = pallas_affine(y_pad, scale, shift, relu)
    return out[:m_true, :c_true]


def conv2d_bn(x_nhwc, w, gamma, beta, *, stride=1, pad=0, relu=True,
              residual=None, eps=1e-5):
    """Conv(no bias) -> BatchNorm(batch stats) [-> +residual] [-> ReLU].
    Activations flow in bf16; BN statistics come from the f32 accumulator."""
    n, h, wdt, cin = x_nhwc.shape
    cout, _, kh, kw = w.shape
    ho = (h + 2 * pad - kh) // stride + 1
    wo = (wdt + 2 * pad - kw) // stride + 1
    xb = x_nhwc.astype(jnp.bfloat16)
    if kh == 1 and kw == 1 and stride == 1 and pad == 0:
        patches = xb.reshape(n * h * wdt, cin)        # 1x1 conv: no im2col
    else:
        # TODO(synk): im2col still materializes kh*kw shifted bf16 copies in
        # HBM; a tap-streaming conv (taps folded into the K grid axis /
        # manual-DMA inner loop) would remove this traffic.
        xp = jnp.pad(xb, ((0, 0), (pad, pad), (pad, pad), (0, 0)))
        cols = [xp[:, i:i + ho * stride:stride, j:j + wo * stride:stride, :]
                for i in range(kh) for j in range(kw)]
        patches = jnp.concatenate(cols, axis=-1).reshape(
            n * ho * wo, kh * kw * cin)
    wmat = jnp.transpose(w, (2, 3, 1, 0)).reshape(kh * kw * cin, cout)
    y_pad, s, q = pallas_matmul_bn(patches, wmat)
    res2d = None
    if residual is not None:
        res2d = residual.reshape(-1, residual.shape[-1]).astype(jnp.bfloat16)
    out2d = batchnorm_apply(y_pad, s, q, gamma, beta, n * ho * wo, cout,
                            relu=relu, residual=res2d, eps=eps)
    return out2d.reshape(n, ho, wo, cout)


def avgpool2d(x_nhwc, k):
    # TODO(synk): AvgPool2d kept as JAX reshape/mean glue (tiny reduction).
    n, h, w, c = x_nhwc.shape
    y = x_nhwc.astype(jnp.float32).reshape(n, h // k, k, w // k, k, c)
    return y.mean(axis=(2, 4)).astype(jnp.bfloat16)


def bilinear_resize(x_hwc, ho, wo):
    """F.interpolate(mode='bilinear', align_corners=False) equivalent."""
    hi, wi, c = x_hwc.shape
    if (hi, wi) == (ho, wo):
        return x_hwc
    # TODO(synk): gather-heavy bilinear resample stays in JAX glue.
    ys = jnp.clip((jnp.arange(ho) + 0.5) * (hi / ho) - 0.5, 0.0, hi - 1.0)
    xs = jnp.clip((jnp.arange(wo) + 0.5) * (wi / wo) - 0.5, 0.0, wi - 1.0)
    y0 = jnp.floor(ys).astype(jnp.int32)
    x0 = jnp.floor(xs).astype(jnp.int32)
    y1 = jnp.minimum(y0 + 1, hi - 1)
    x1 = jnp.minimum(x0 + 1, wi - 1)
    wy = (ys - y0)[:, None, None]
    wx = (xs - x0)[None, :, None]
    g = lambda yy, xx: x_hwc[yy[:, None], xx[None, :], :]
    return ((1 - wy) * (1 - wx) * g(y0, x0) + (1 - wy) * wx * g(y0, x1)
            + wy * (1 - wx) * g(y1, x0) + wy * wx * g(y1, x1))


# ---------------------------------------------------------------------------
# Model blocks
# ---------------------------------------------------------------------------

def stem(x, p):
    x = conv2d_bn(x, p['conv1_w'], p['bn1_g'], p['bn1_b'],
                  stride=2, pad=1, relu=True)
    x = conv2d_bn(x, p['conv2_w'], p['bn2_g'], p['bn2_b'],
                  stride=1, pad=1, relu=True)
    x = conv2d_bn(x, p['conv3_w'], p['bn3_g'], p['bn3_b'],
                  stride=1, pad=1, relu=True)
    return avgpool2d(x, 2)


def bottleneck(x, p):
    stride = p['stride']
    out = conv2d_bn(x, p['conv1_w'], p['bn1_g'], p['bn1_b'], relu=True)
    out = conv2d_bn(out, p['conv2_w'], p['bn2_g'], p['bn2_b'],
                    pad=1, relu=True)
    if stride > 1:
        out = avgpool2d(out, stride)
    if 'ds_conv_w' in p:
        idt = avgpool2d(x, stride) if stride > 1 else x
        idt = conv2d_bn(idt, p['ds_conv_w'], p['ds_bn_g'], p['ds_bn_b'],
                        relu=False)
    else:
        idt = x
    # bn3(conv3(out)) + identity, then ReLU (fused in one Pallas pass).
    return conv2d_bn(out, p['conv3_w'], p['bn3_g'], p['bn3_b'],
                     relu=True, residual=idt)


def attnpool(x_nhwc, p, num_heads):
    n, h, w, c = x_nhwc.shape
    tokens = x_nhwc.reshape(n, h * w, c).astype(jnp.float32)
    cls = jnp.mean(tokens, axis=1, keepdims=True)
    seq = jnp.concatenate([cls, tokens], axis=1)                 # (N, L, C)
    L = h * w + 1

    pos = p['pos']
    sdim = p['spacial_dim']
    cls_pos = pos[0:1]
    sp = bilinear_resize(pos[1:].reshape(sdim, sdim, c), h, w).reshape(h * w, c)
    seq = seq + jnp.concatenate([cls_pos, sp], axis=0)[None]

    x2 = seq.reshape(n * L, c)

    # Fused Q/K/V projection: one GEMM against the concatenated (C, 3C) weight.
    w_qkv = jnp.concatenate([p['q_w'], p['k_w'], p['v_w']], axis=0).T
    b_qkv = jnp.concatenate([p['q_b'], p['k_b'], p['v_b']])[None]
    qkv = pallas_matmul_bias(x2, w_qkv, b_qkv)                   # (N*L, 3C) f32
    q, k, v = qkv[:, :c], qkv[:, c:2 * c], qkv[:, 2 * c:]

    d = c // num_heads
    dpad = _round_up(d, 128)

    def to_heads(t):
        t = t.reshape(n, L, num_heads, d).transpose(0, 2, 1, 3)
        t = t.reshape(n * num_heads, L, d)
        if dpad != d:
            t = jnp.pad(t, ((0, 0), (0, 0), (0, dpad - d)))
        return t.astype(jnp.bfloat16)

    o = pallas_attention_heads(to_heads(q), to_heads(k), to_heads(v),
                               scale=float(d) ** -0.5)
    o = o[:, :, :d].reshape(n, num_heads, L, d).transpose(0, 2, 1, 3)
    o = o.reshape(n * L, c)

    out = pallas_matmul_bias(o, p['c_w'].T, p['c_b'][None]).reshape(n, L, -1)
    global_feat = out[:, 0]
    feature_map = out[:, 1:].reshape(n, h, w, -1)
    return global_feat, feature_map


def clip_resnet_forward(params, x_nchw, num_heads=32):
    x = jnp.transpose(x_nchw, (0, 2, 3, 1))                       # NHWC
    x = stem(x, params['stem'])
    outs = []
    for name in ('layer1', 'layer2', 'layer3', 'layer4'):
        for bp in params[name]:
            x = bottleneck(x, bp)
        if name != 'layer4':
            outs.append(jnp.transpose(x, (0, 3, 1, 2)).astype(jnp.float32))
    x_global, x_local_nhwc = attnpool(x, params['attnpool'], num_heads)
    x_local = jnp.transpose(x_local_nhwc, (0, 3, 1, 2)).astype(jnp.float32)
    outs.append(x_local)
    outs.append((x_global.astype(jnp.float32), x_local))
    return tuple(outs)


# ---------------------------------------------------------------------------
# Deterministic synthetic parameters (mirrors module __init__ shapes)
# ---------------------------------------------------------------------------

def _normal(key, shape, std):
    return std * jax.random.normal(key, shape, jnp.float32)


def init_params(key, width, layers, output_dim, input_resolution):
    keys = iter(jax.random.split(key, 256))
    p = {}
    w2 = width // 2
    p['stem'] = {
        'conv1_w': _normal(next(keys), (w2, 3, 3, 3), 0.05),
        'bn1_g': jnp.ones((w2,)), 'bn1_b': jnp.zeros((w2,)),
        'conv2_w': _normal(next(keys), (w2, w2, 3, 3), 0.05),
        'bn2_g': jnp.ones((w2,)), 'bn2_b': jnp.zeros((w2,)),
        'conv3_w': _normal(next(keys), (width, w2, 3, 3), 0.05),
        'bn3_g': jnp.ones((width,)), 'bn3_b': jnp.zeros((width,)),
    }

    inplanes = width

    def make_layer(planes, blocks, stride):
        nonlocal inplanes
        blks = []
        s = stride
        for _ in range(blocks):
            bp = {
                'stride': s,
                'conv1_w': _normal(next(keys), (planes, inplanes, 1, 1), 0.05),
                'bn1_g': jnp.ones((planes,)), 'bn1_b': jnp.zeros((planes,)),
                'conv2_w': _normal(next(keys), (planes, planes, 3, 3), 0.05),
                'bn2_g': jnp.ones((planes,)), 'bn2_b': jnp.zeros((planes,)),
                'conv3_w': _normal(next(keys), (planes * 4, planes, 1, 1), 0.05),
                'bn3_g': jnp.ones((planes * 4,)), 'bn3_b': jnp.zeros((planes * 4,)),
            }
            if s > 1 or inplanes != planes * 4:
                bp['ds_conv_w'] = _normal(next(keys),
                                          (planes * 4, inplanes, 1, 1), 0.05)
                bp['ds_bn_g'] = jnp.ones((planes * 4,))
                bp['ds_bn_b'] = jnp.zeros((planes * 4,))
            blks.append(bp)
            inplanes = planes * 4
            s = 1
        return blks

    p['layer1'] = make_layer(width, layers[0], 1)
    p['layer2'] = make_layer(width * 2, layers[1], 2)
    p['layer3'] = make_layer(width * 4, layers[2], 2)
    p['layer4'] = make_layer(width * 8, layers[3], 2)

    embed_dim = width * 32
    spacial_dim = input_resolution // 32
    p['attnpool'] = {
        'spacial_dim': spacial_dim,
        'pos': _normal(next(keys), (spacial_dim ** 2 + 1, embed_dim), 1.0)
               / (embed_dim ** 0.5),
        'q_w': _normal(next(keys), (embed_dim, embed_dim), 0.02),
        'q_b': jnp.zeros((embed_dim,)),
        'k_w': _normal(next(keys), (embed_dim, embed_dim), 0.02),
        'k_b': jnp.zeros((embed_dim,)),
        'v_w': _normal(next(keys), (embed_dim, embed_dim), 0.02),
        'v_b': jnp.zeros((embed_dim,)),
        'c_w': _normal(next(keys), (output_dim, embed_dim), 0.02),
        'c_b': jnp.zeros((output_dim,)),
    }
    return p


# ---------------------------------------------------------------------------

if __name__ == "__main__":
    key = jax.random.PRNGKey(0)
    kp, kx = jax.random.split(key)

    width = 8                 # -> embed_dim = 256, num_heads = 32, head_dim = 8
    layers = (1, 1, 1, 1)
    output_dim = 32
    input_resolution = 64     # attnpool spatial dim = 2, seq len = 5

    params = init_params(kp, width, layers, output_dim, input_resolution)
    x = jax.random.normal(kx, (2, 3, input_resolution, input_resolution),
                          jnp.float32)                      # NCHW input

    outs = clip_resnet_forward(params, x)
    jax.block_until_ready(outs)

    # Light sanity checks on shapes (mirrors the PyTorch forward outputs).
    assert outs[0].shape == (2, 4 * width, 16, 16)
    assert outs[1].shape == (2, 8 * width, 8, 8)
    assert outs[2].shape == (2, 16 * width, 4, 4)
    assert outs[3].shape == (2, output_dim, 2, 2)
    assert outs[4][0].shape == (2, output_dim)
    print("KERNEL_OK")
</pallas_src>

<mosaic_0001>
module attributes {stable_mosaic.version = 11 : i64} {
  func.func @_mm_bn_single_kernel(%arg0: i32, %arg1: i32, %arg2: memref<512x32xbf16, #tpu.memory_space<vmem>>, %arg3: memref<32x128xbf16, #tpu.memory_space<vmem>>, %arg4: memref<512x128xbf16, #tpu.memory_space<vmem>>, %arg5: memref<1x8x128xf32, #tpu.memory_space<vmem>>) attributes {dimension_semantics = [#tpu.dimension_semantics<parallel>, #tpu.dimension_semantics<parallel>], iteration_bounds = array<i64: 4, 1>, scalar_prefetch = 0 : i64, scratch_operands = 0 : i64, tpu.core_type = #tpu.core_type<tc>, window_params = [{transform_indices = @transform_0, window_bounds = array<i64: 512, 32>}, {transform_indices = @transform_1, window_bounds = array<i64: 32, 128>}, {transform_indices = @transform_2, window_bounds = array<i64: 512, 128>}, {transform_indices = @transform_3, window_bounds = array<i64: 1, 8, 128>}]} {
    %c0 = arith.constant 0 : index
    %c0_0 = arith.constant 0 : index
    %0 = vector.load %arg2[%c0, %c0_0] : memref<512x32xbf16, #tpu.memory_space<vmem>>, vector<512x32xbf16>
    %c0_1 = arith.constant 0 : index
    %c0_2 = arith.constant 0 : index
    %1 = vector.load %arg3[%c0_1, %c0_2] : memref<32x128xbf16, #tpu.memory_space<vmem>>, vector<32x128xbf16>
    %cst = arith.constant dense<0.000000e+00> : vector<512x128xf32>
    %2 = tpu.matmul %0, %1, %cst {dimension_numbers = #tpu.dot_dimension_numbers<[1], [0], [0], [1], [0, 0, 1, 1], [], []>} : vector<512x32xbf16>, vector<32x128xbf16>, vector<512x128xf32> -> vector<512x128xf32>
    %3 = arith.truncf %2 : vector<512x128xf32> to vector<512x128xbf16>
    %c0_3 = arith.constant 0 : index
    %c0_4 = arith.constant 0 : index
    %4 = vector.load %arg4[%c0_3, %c0_4] : memref<512x128xbf16, #tpu.memory_space<vmem>>, vector<512x128xbf16>
    tpu.vector_store %arg4[%c0_3, %c0_4], %3 {strides = array<i32>} : memref<512x128xbf16, #tpu.memory_space<vmem>>, vector<512x128xbf16>,
    %cst_5 = arith.constant dense<0.000000e+00> : vector<128xf32>
    %5 = vector.multi_reduction <add>, %2, %cst_5 [0] : vector<512x128xf32> to vector<128xf32>
    %6 = vector.shape_cast %5 : vector<128xf32> to vector<1x128xf32>
    %7 = arith.mulf %2, %2 : vector<512x128xf32>
    %cst_6 = arith.constant dense<0.000000e+00> : vector<128xf32>
    %8 = vector.multi_reduction <add>, %7, %cst_6 [0] : vector<512x128xf32> to vector<128xf32>
    %9 = vector.shape_cast %8 : vector<128xf32> to vector<1x128xf32>
    %cst_7 = arith.constant 0.000000e+00 : f32
    %10 = vector.broadcast %cst_7 : f32 to vector<6x128xf32>
    %11 = tpu.concatenate %6, %9, %10 in 0 : vector<1x128xf32>, vector<1x128xf32>, vector<6x128xf32> -> vector<8x128xf32>
    %c0_8 = arith.constant 0 : index
    %c0_9 = arith.constant 0 : index
    %c0_10 = arith.constant 0 : index
    %12 = vector.load %arg5[%c0_8, %c0_9, %c0_10] : memref<1x8x128xf32, #tpu.memory_space<vmem>>, vector<1x8x128xf32>
    %13 = vector.shape_cast %12 : vector<1x8x128xf32> to vector<8x128xf32>
    %14 = vector.shape_cast %11 : vector<8x128xf32> to vector<1x8x128xf32>
    tpu.vector_store %arg5[%c0_8, %c0_9, %c0_10], %14 {strides = array<i32>} : memref<1x8x128xf32, #tpu.memory_space<vmem>>, vector<1x8x128xf32>,
    return
  }
  func.func @transform_0(%arg0: i32, %arg1: i32) -> (i32, i32) {
    %c0_i32 = arith.constant 0 : i32
    %c0_i32_0 = arith.constant 0 : i32
    return %arg0, %c0_i32 : i32, i32
  }
  func.func @transform_1(%arg0: i32, %arg1: i32) -> (i32, i32) {
    %c0_i32 = arith.constant 0 : i32
    %c0_i32_0 = arith.constant 0 : i32
    return %c0_i32, %arg1 : i32, i32
  }
  func.func @transform_2(%arg0: i32, %arg1: i32) -> (i32, i32) {
    %c0_i32 = arith.constant 0 : i32
    return %arg0, %arg1 : i32, i32
  }
  func.func @transform_3(%arg0: i32, %arg1: i32) -> (i32, i32, i32) {
    %c0_i32 = arith.constant 0 : i32
    %c0_i32_0 = arith.constant 0 : i32
    return %arg0, %c0_i32, %arg1 : i32, i32, i32
  }
}

</mosaic_0001>

<bundles_post_ra>
// kernel: tpu_custom_call.1
= control target key start
LH: loop header
LB: loop body
LE: loop exit
PB: predicated region body
PF: predicated region fallthrough
CT: control target
= control target key end

     0   :  { %9 = vsyncpa [#allocation3], 0  ;;  %s2712_s0 = inlined_call_operand.vmem [shape: bf16[2048,32], index: 0, kind: input, shape index: {}]   ;;  %s2713_s1 = inlined_call_operand.vmem [shape: bf16[32,128], index: 1, kind: input, shape index: {}]   ;;  %s2714_s2 = inlined_call_operand.hbm [shape: bf16[2048,128], index: 2, kind: output, shape index: {0}]   ;;  %s2715_s3 = inlined_call_operand.hbm [shape: f32[4,8,128], index: 3, kind: output, shape index: {1}]  }
   0x1   :  { %11 = vsyncpa [#allocation3 + $0x1], 0 }
   0x2   :  { %12 = vsyncpa [#allocation5], 0 }
   0x3   :  { %14 = vsyncpa [#allocation5 + $0x1], 0  ;;  %s2265_s12 = smov 0   ;;  %s2267_s13 = smov 0  }
   0x4   :  { %s2269_s14 = smov 0   ;;  %s2271_s15 = smov 0  }
   0x5   :  { %s2273_s16 = smov 0   ;;  %s2275_s17 = smov 0  }
   0x6 LB: > { %s1524_s18 = sadd.s32 4294967295, %s2239_s17   ;;  %s1525_s19 = sadd.s32 4294967294, %s2239_s17   ;;  %s2239_s17 = sphi %s2275_s17, %s20_s17   ;;  %s2235_s16 = sphi %s2273_s16, %s2722_s16   ;;  %s2231_s15 = sphi %s2271_s15, %s2721_s15   ;;  %s2227_s14 = sphi %s2269_s14, %s2720_s14   ;;  %s2223_s13 = sphi %s2267_s13, %s2719_s13   ;;  %s2219_s12 = sphi %s2265_s12, %s2718_s12  }
   0x7   : > { %s32_s20 = sadd.s32 1, %s2235_s16  ;;  %s93_s21 = sadd.s32 1, %s2227_s14 }
   0x8   : > { %p34_p0 = scmp.ge.s32.totalorder %s32_s20, 4  ;;  %p103_p1 = scmp.ne.s32.totalorder %s2227_s14, %s2223_s13 }
   0x9   : > { %p104_p2 = scmp.eq.s32.totalorder %s1524_s18, 3  ;;  %p109_p3 = scmp.ne.s32.totalorder %s2223_s13, %s2219_s12 }
   0xa   : > { %s2724_s20 = smov (%p34_p0, %s32_s20), 0  ;;  %p110_p5 = scmp.eq.s32.totalorder %s1525_s19, 3 }
   0xb   : > { %p2305_p4 = por %p104_p2, %p103_p1  ;;  %s88_s23 = ssub.s32 %s2235_s16, %s2724_s20 }
   0xc   : > { %p1529_p6 = scmp.ge.s32.totalorder %s2239_s17, 1  ;;  %p91_p7 = scmp.eq.s32.totalorder %s88_s23, 0 }
   0xd   : > { %p2312_p8 = por %p110_p5, %p109_p3  ;;  %p172_p9 = scmp.lt.s32.totalorder %s2239_s17, 5 }
   0xe   : > { %s2318_s25 = scalar_select %p91_p7, %s2227_s14, %s93_s21  }
   0xf   : > { %p173_p10 = pnand %p1529_p6, %p172_p9 }
  0x10   : > { %v2095_v0 = vld [vmem:[%s2713_s1] sm:$0xff] (!%p173_p10)   ;;  %s1532_s28 = sshll.u32 (!%p173_p10), %s2231_s15, 6  ;;  %v2096_v1 = vld [vmem:[%s2713_s1 + $0x8] sm:$0xff] (!%p173_p10)   ;;  %vm457_vm0 = vcmask (!%p173_p10), 261120   ;;  %s2397_s8 = sand.u32 (!%p173_p10), 1, %s2223_s13  }
  0x11   : > { %176 = sbr.rel (%p173_p10) target bundleno = 411 (0x19b), region = 28  ;;  %p206_p11 = scmp.lt.s32.totalorder (!%p173_p10), %s1532_s28, 255  ;;  %1961 = vmatprep.subr.bf16.mxu0 (!%p173_p10), %v2095_v0  ;;  %2029 = vmatprep.subr.bf16.mxu1 (!%p173_p10), %v2095_v0 }
  0x12   : > { %1962 = vmatpush3.bf16.msra.mxu0 (!%p173_p10), %v2095_v0  ;;  %2031 = vmatpush3.bf16.msra.mxu1 (!%p173_p10), %v2095_v0  ;;  %s1530_s9 = sshll.u32 (!%p173_p10), %s2397_s8, 8  ;;  %s1735_s11 = sshll.u32 (!%p173_p10), %s2231_s15, 12 }
  0x13   : > { %1963 = vmatprep.subr.bf16.mxu0 (!%p173_p10), %v2096_v1  ;;  %2030 = vmatprep.subr.bf16.mxu1 (!%p173_p10), %v2096_v1  ;;  %s2400_s10 = scalar_lea.vmem (!%p173_p10), [#allocation2], %s1530_s9  ;;  %s2546_s23 = scalar_lea.hbm (!%p173_p10), %s2714_s2, %s1735_s11 }
  0x14   : > { %s1390_s18 = sshll.u32 (!%p173_p10), %s2400_s10, 4  ;;  %s1371_s26 = scalar_lea.sflag (!%p173_p10), [#allocation3], %s2397_s8  ;;  %s2548_s18 = int_to_ptr.vmem [resolvable:$true] %s1390_s18 }
  0x15   : > { %s2129_s27 = scalar_lea.vmem (!%p173_p10), %s2548_s18, 4096 }
  0x16   : > { %1964 = vmatpush3.bf16.msra.mxu0 (!%p173_p10), %v2096_v1  ;;  %2032 = vmatpush3.bf16.msra.mxu1 (!%p173_p10), %v2096_v1  ;;  %p2130_p12 = scmp.ne.s32.totalorder (!%p173_p10), %s2548_s18, %s2129_s27 }
  0x18   : > { %s2726_s28 = smov (!%p206_p11, %s1532_s28), 255  ;;  %p2131_p13 = pnand %p2130_p12, %p2305_p4 }
  0x19   : > { %s1533_s4 = sshll.u32 %s2726_s28, 2  ;;  %s2241_s28 = smov [#allocation2]  }
  0x1a   : > { %s2330_s7 = scalar_lea.vmem %s2712_s0, %s1533_s4  ;;  %p2132_p0 = pneg %p2131_p13 }
  0x1b   : > { %v2097_v2 = vld [vmem:[%s2330_s7] sm:$0xff]   ;;  %v2098_v3 = vld [vmem:[%s2330_s7 + $0x8] sm:$0xff]   ;;  %v2099_v4 = vld [vmem:[%s2330_s7 + $0x10] sm:$0xff]   ;;  %s2133_s29 = sshll.u32 %s2241_s28, 4  ;;  %s2134_s29 = int_to_ptr.vmem [resolvable:$false] %s2133_s29 }
  0x1c   : > { %1965 = vmatprep.mubr.msk.bf16.mxu0 %vm457_vm0, %v2097_v2  ;;  %v2100_v5 = vld [vmem:[%s2330_s7 + $0x18] sm:$0xff]   ;;  %v2101_v6 = vld [vmem:[%s2330_s7 + $0x20] sm:$0xff]   ;;  %v2102_v7 = vld [vmem:[%s2330_s7 + $0x28] sm:$0xff]   ;;  %s2135_s30 = scalar_lea.vmem %s2134_s29, 8192  ;;  %p2136_p1 = scmp.lt.s32.totalorder %s2548_s18, %s2134_s29 }
  0x1d   : > { %1966 = vmatmul.mubr.msk.bf16.vlgmr.msra.gmra.mrb[0].mxu0 %vm457_vm0, %v2098_v3  ;;  %v2103_v8 = vld [vmem:[%s2330_s7 + $0x30] sm:$0xff]   ;;  %v2113_v9 = vld [vmem:[%s2330_s7 + $0x80] sm:$0xff]   ;;  %v2114_v10 = vld [vmem:[%s2330_s7 + $0x88] sm:$0xff]   ;;  %p2137_p2 = scmp.lt.s32.totalorder %s2135_s30, %s2129_s27 }
  0x1e   : > { %1969 = vmatprep.mubr.msk.bf16.mxu0 %vm457_vm0, %v2099_v4  ;;  %1997 = vmatprep.mubr.msk.bf16.mxu1 %vm457_vm0, %v2113_v9  ;;  %v2115_v11 = vld [vmem:[%s2330_s7 + $0x90] sm:$0xff]   ;;  %v2104_v12 = vld [vmem:[%s2330_s7 + $0x38] sm:$0xff]   ;;  %v2105_v13 = vld [vmem:[%s2330_s7 + $0x40] sm:$0xff]  }
  0x1f   : > { %1998 = vmatmul.mubr.msk.bf16.vlgmr.msra.gmra.mrb[0].mxu1 %vm457_vm0, %v2114_v10  ;;  %v2116_v14 = vld [vmem:[%s2330_s7 + $0x98] sm:$0xff]   ;;  %v2117_v15 = vld [vmem:[%s2330_s7 + $0xa0] sm:$0xff]   ;;  %v2106_v16 = vld [vmem:[%s2330_s7 + $0x48] sm:$0xff]   ;;  %p2138_p3 = por %p2137_p2, %p2136_p1 }
  0x20   : > { %2001 = vmatprep.mubr.msk.bf16.mxu1 %vm457_vm0, %v2115_v11  ;;  %v2118_v17 = vld [vmem:[%s2330_s7 + $0xa8] sm:$0xff]   ;;  %v2107_v18 = vld [vmem:[%s2330_s7 + $0x50] sm:$0xff]   ;;  %v2108_v20 = vld [vmem:[%s2330_s7 + $0x58] sm:$0xff]  }
  0x21   : > { %v2119_v19 = vld [vmem:[%s2330_s7 + $0xb0] sm:$0xff]   ;;  %v2120_v21 = vld [vmem:[%s2330_s7 + $0xb8] sm:$0xff]   ;;  %v2109_v22 = vld [vmem:[%s2330_s7 + $0x60] sm:$0xff]   ;;  %p2139_p5 = pnand %p2138_p3, %p2132_p0 }
  0x22   : > { %v2121_v23 = vld [vmem:[%s2330_s7 + $0xc0] sm:$0xff]   ;;  %v2110_v24 = vld [vmem:[%s2330_s7 + $0x68] sm:$0xff]   ;;  %v2111_v26 = vld [vmem:[%s2330_s7 + $0x70] sm:$0xff]  }
  0x23   : > { %v2122_v25 = vld [vmem:[%s2330_s7 + $0xc8] sm:$0xff]   ;;  %v2123_v27 = vld [vmem:[%s2330_s7 + $0xd0] sm:$0xff]   ;;  %v2112_v28 = vld [vmem:[%s2330_s7 + $0x78] sm:$0xff]  }
  0x24   : > { %v2124_v29 = vld [vmem:[%s2330_s7 + $0xd8] sm:$0xff]   ;;  %v2125_v30 = vld [vmem:[%s2330_s7 + $0xe0] sm:$0xff]   ;;  %v2126_v31 = vld [vmem:[%s2330_s7 + $0xe8] sm:$0xff]  }
  0x25   : > { %1970 = vmatmul.mubr.msk.bf16.gmra.mrb[4].mxu0 %vm457_vm0, %v2100_v5  ;;  %v2127_v32 = vld [vmem:[%s2330_s7 + $0xf0] sm:$0xff]   ;;  %v2128_v33 = vld [vmem:[%s2330_s7 + $0xf8] sm:$0xff]  }
  0x26   : > { %1973 = vmatprep.mubr.msk.bf16.mxu0 %vm457_vm0, %v2101_v6 }
  0x27   : > { %2002 = vmatmul.mubr.msk.bf16.gmra.mrb[4].mxu1 %vm457_vm0, %v2116_v14 }
  0x28   : > { %2005 = vmatprep.mubr.msk.bf16.mxu1 %vm457_vm0, %v2117_v15 }
  0x2d   : > { %1974 = vmatmul.mubr.msk.bf16.gmra.mrb[8].mxu0 %vm457_vm0, %v2102_v7 }
  0x2e   : > { %1977 = vmatprep.mubr.msk.bf16.mxu0 %vm457_vm0, %v2103_v8 }
  0x2f   : > { %2006 = vmatmul.mubr.msk.bf16.gmra.mrb[8].mxu1 %vm457_vm0, %v2118_v17 }
  0x30   : > { %2009 = vmatprep.mubr.msk.bf16.mxu1 %vm457_vm0, %v2119_v19 }
  0x35   : > { %1978 = vmatmul.mubr.msk.bf16.gmra.mrb[12].mxu0 %vm457_vm0, %v2104_v12 }
  0x36   : > { %1981 = vmatprep.mubr.msk.bf16.mxu0 %vm457_vm0, %v2105_v13 }
  0x37   : > { %2010 = vmatmul.mubr.msk.bf16.gmra.mrb[12].mxu1 %vm457_vm0, %v2120_v21 }
  0x38   : > { %2013 = vmatprep.mubr.msk.bf16.mxu1 %vm457_vm0, %v2121_v23 }
  0x3d   : > { %1982 = vmatmul.mubr.msk.bf16.gmra.mrb[16].mxu0 %vm457_vm0, %v2106_v16 }
  0x3e   : > { %1985 = vmatprep.mubr.msk.bf16.mxu0 %vm457_vm0, %v2107_v18 }
  0x3f   : > { %2014 = vmatmul.mubr.msk.bf16.gmra.mrb[16].mxu1 %vm457_vm0, %v2122_v25 }
  0x40   : > { %2017 = vmatprep.mubr.msk.bf16.mxu1 %vm457_vm0, %v2123_v27 }
  0x45   : > { %1986 = vmatmul.mubr.msk.bf16.gmra.mrb[20].mxu0 %vm457_vm0, %v2108_v20 }
  0x46   : > { %1989 = vmatprep.mubr.msk.bf16.mxu0 %vm457_vm0, %v2109_v22 }
  0x47   : > { %2018 = vmatmul.mubr.msk.bf16.gmra.mrb[20].mxu1 %vm457_vm0, %v2124_v29 }
  0x48   : > { %2021 = vmatprep.mubr.msk.bf16.mxu1 %vm457_vm0, %v2125_v30 }
  0x4d   : > { %1990 = vmatmul.mubr.msk.bf16.gmra.mrb[24].mxu0 %vm457_vm0, %v2110_v24 }
  0x4e   : > { %1993 = vmatprep.mubr.msk.bf16.mxu0 %vm457_vm0, %v2111_v26 }
  0x4f   : > { %2022 = vmatmul.mubr.msk.bf16.gmra.mrb[24].mxu1 %vm457_vm0, %v2126_v31 }
  0x50   : > { %2025 = vmatprep.mubr.msk.bf16.mxu1 %vm457_vm0, %v2127_v32 }
  0x55   : > { %1994 = vmatmul.mubr.msk.bf16.gmra.mrb[28].mxu0 %vm457_vm0, %v2112_v28 }
  0x57   : > { %2026 = vmatmul.mubr.msk.bf16.gmra.mrb[28].mxu1 %vm457_vm0, %v2128_v33 }
  0xf0   : > { %v1967_v34 = vpop.f32.mrb[0].mxu0 }
  0xf1   : > { %v588_v35 = vpop.f32.mrb[1].mxu0  ;;  %v1234_v43 = vmul.f32 %v1967_v34, %v1967_v34 }
  0xf2   : > { %v1968_v36 = vpop.f32.mrb[2].mxu0  ;;  %v1232_v39 = vmul.f32 %v588_v35, %v588_v35  ;;  %v2406_v4 = vpop.f32.mrb[0].mxu1 }
  0xf3   : > { %v1744_v37 = vpack.c.bf16 %v1968_v36, %v1967_v34  ;;  %v591_v38 = vpop.f32.mrb[3].mxu0  ;;  %v1235_v46 = vmul.f32 %v1968_v36, %v1968_v36  ;;  %v2408_v6 = vpop.f32.mrb[1].mxu1 }
  0xf4   : > { %v1739_v40 = vpack.c.bf16 %v591_v38, %v588_v35  ;;  %v1163_v41 = vadd.f32 %v591_v38, %v588_v35  ;;  %v1233_v42 = vmul.f32 %v591_v38, %v591_v38  ;;  %v2410_v11 = vpop.f32.mrb[2].mxu1 }
  0xf5   : > { %1896 = vst [vmem:[%s2400_s10 + $0x8] sm:$0xff] %v1744_v37   ;;  %v1824_v14 = vpack.c.bf16 %v2410_v11, %v2406_v4  ;;  %v2414_v15 = vpop.f32.mrb[3].mxu1 }
  0xf6   : > { %1740 = vst [vmem:[%s2400_s10] sm:$0xff] %v1739_v40   ;;  %v1164_v44 = vadd.f32 %v1967_v34, %v1163_v41  ;;  %v1296_v45 = vadd.f32 %v1233_v42, %v1232_v39  ;;  %v1819_v20 = vpack.c.bf16 %v2414_v15, %v2408_v6 }
  0xf7   : > { %1912 = vst [vmem:[%s2400_s10 + $0x88] sm:$0xff] %v1824_v14  }
  0xf8   : > { %v1297_v47 = vadd.f32 %v1296_v45, %v1234_v43  ;;  %v1971_v48 = vpop.f32.mrb[4].mxu0  ;;  %v1165_v49 = vadd.f32 %v1968_v36, %v1164_v44  ;;  %1911 = vst [vmem:[%s2400_s10 + $0x80] sm:$0xff] %v1819_v20  }
  0xf9   : > { %v604_v50 = vpop.f32.mrb[5].mxu0  ;;  %v1238_v61 = vmul.f32 %v1971_v48, %v1971_v48 }
  0xfa   : > { %v1166_v51 = vadd.f32 %v1165_v49, %v604_v50  ;;  %v1236_v52 = vmul.f32 %v604_v50, %v604_v50  ;;  %v1298_v53 = vadd.f32 %v1297_v47, %v1235_v46  ;;  %v1972_v54 = vpop.f32.mrb[6].mxu0  ;;  %v2422_v28 = vpop.f32.mrb[4].mxu1 }
  0xfb   : > { %v1754_v55 = vpack.c.bf16 %v1972_v54, %v1971_v48  ;;  %v607_v56 = vpop.f32.mrb[7].mxu0  ;;  %v1239_v0 = vmul.f32 %v1972_v54, %v1972_v54  ;;  %v2424_v30 = vpop.f32.mrb[5].mxu1 }
  0xfc   : > { %v1299_v57 = vadd.f32 %v1298_v53, %v1236_v52  ;;  %v1749_v58 = vpack.c.bf16 %v607_v56, %v604_v50  ;;  %v1167_v59 = vadd.f32 %v1166_v51, %v607_v56  ;;  %v1237_v60 = vmul.f32 %v607_v56, %v607_v56  ;;  %v2426_v35 = vpop.f32.mrb[6].mxu1 }
  0xfd   : > { %1898 = vst [vmem:[%s2400_s10 + $0x18] sm:$0xff] %v1754_v55   ;;  %v1834_v38 = vpack.c.bf16 %v2426_v35, %v2422_v28  ;;  %v2430_v39 = vpop.f32.mrb[7].mxu1 }
  0xfe   : > { %1897 = vst [vmem:[%s2400_s10 + $0x10] sm:$0xff] %v1749_v58   ;;  %v1168_v62 = vadd.f32 %v1971_v48, %v1167_v59  ;;  %v1300_v63 = vadd.f32 %v1299_v57, %v1237_v60  ;;  %v1829_v44 = vpack.c.bf16 %v2430_v39, %v2424_v30 }
  0xff   : > { %1914 = vst [vmem:[%s2400_s10 + $0x98] sm:$0xff] %v1834_v38  }
 0x100   : > { %v1301_v1 = vadd.f32 %v1300_v63, %v1238_v61  ;;  %v1975_v2 = vpop.f32.mrb[8].mxu0  ;;  %v1169_v3 = vadd.f32 %v1972_v54, %v1168_v62  ;;  %1913 = vst [vmem:[%s2400_s10 + $0x90] sm:$0xff] %v1829_v44  }
 0x101   : > { %v620_v5 = vpop.f32.mrb[9].mxu0  ;;  %v1242_v21 = vmul.f32 %v1975_v2, %v1975_v2 }
 0x102   : > { %v1170_v7 = vadd.f32 %v1169_v3, %v620_v5  ;;  %v1240_v8 = vmul.f32 %v620_v5, %v620_v5  ;;  %v1302_v9 = vadd.f32 %v1301_v1, %v1239_v0  ;;  %v1976_v10 = vpop.f32.mrb[10].mxu0  ;;  %v2438_v52 = vpop.f32.mrb[8].mxu1 }
 0x103   : > { %v1764_v12 = vpack.c.bf16 %v1976_v10, %v1975_v2  ;;  %v623_v13 = vpop.f32.mrb[11].mxu0  ;;  %v1243_v24 = vmul.f32 %v1976_v10, %v1976_v10  ;;  %v2440_v54 = vpop.f32.mrb[9].mxu1 }
 0x104   : > { %v1303_v16 = vadd.f32 %v1302_v9, %v1240_v8  ;;  %v1759_v17 = vpack.c.bf16 %v623_v13, %v620_v5  ;;  %v1171_v18 = vadd.f32 %v1170_v7, %v623_v13  ;;  %v1241_v19 = vmul.f32 %v623_v13, %v623_v13  ;;  %v2442_v59 = vpop.f32.mrb[10].mxu1 }
 0x105   : > { %1900 = vst [vmem:[%s2400_s10 + $0x28] sm:$0xff] %v1764_v12   ;;  %v1844_v62 = vpack.c.bf16 %v2442_v59, %v2438_v52  ;;  %v2446_v63 = vpop.f32.mrb[11].mxu1 }
 0x106   : > { %1899 = vst [vmem:[%s2400_s10 + $0x20] sm:$0xff] %v1759_v17   ;;  %v1172_v22 = vadd.f32 %v1975_v2, %v1171_v18  ;;  %v1304_v23 = vadd.f32 %v1303_v16, %v1241_v19  ;;  %v1839_v5 = vpack.c.bf16 %v2446_v63, %v2440_v54 }
 0x107   : > { %1916 = vst [vmem:[%s2400_s10 + $0xa8] sm:$0xff] %v1844_v62  }
 0x108   : > { %v1305_v25 = vadd.f32 %v1304_v23, %v1242_v21  ;;  %v1979_v26 = vpop.f32.mrb[12].mxu0  ;;  %v1173_v27 = vadd.f32 %v1976_v10, %v1172_v22  ;;  %1915 = vst [vmem:[%s2400_s10 + $0xa0] sm:$0xff] %v1839_v5  }
 0x109   : > { %v636_v29 = vpop.f32.mrb[13].mxu0  ;;  %v1246_v45 = vmul.f32 %v1979_v26, %v1979_v26 }
 0x10a   : > { %v1174_v31 = vadd.f32 %v1173_v27, %v636_v29  ;;  %v1244_v32 = vmul.f32 %v636_v29, %v636_v29  ;;  %v1306_v33 = vadd.f32 %v1305_v25, %v1243_v24  ;;  %v1980_v34 = vpop.f32.mrb[14].mxu0  ;;  %v2454_v16 = vpop.f32.mrb[12].mxu1 }
 0x10b   : > { %v1774_v36 = vpack.c.bf16 %v1980_v34, %v1979_v26  ;;  %v639_v37 = vpop.f32.mrb[15].mxu0  ;;  %v1247_v48 = vmul.f32 %v1980_v34, %v1980_v34  ;;  %v2456_v18 = vpop.f32.mrb[13].mxu1 }
 0x10c   : > { %v1307_v40 = vadd.f32 %v1306_v33, %v1244_v32  ;;  %v1769_v41 = vpack.c.bf16 %v639_v37, %v636_v29  ;;  %v1175_v42 = vadd.f32 %v1174_v31, %v639_v37  ;;  %v1245_v43 = vmul.f32 %v639_v37, %v639_v37  ;;  %v2458_v23 = vpop.f32.mrb[14].mxu1 }
 0x10d   : > { %1902 = vst [vmem:[%s2400_s10 + $0x38] sm:$0xff] %v1774_v36   ;;  %v2462_v27 = vpop.f32.mrb[15].mxu1 }
 0x10e   : > { %1901 = vst [vmem:[%s2400_s10 + $0x30] sm:$0xff] %v1769_v41   ;;  %v1176_v46 = vadd.f32 %v1979_v26, %v1175_v42  ;;  %v1308_v47 = vadd.f32 %v1307_v40, %v1245_v43  ;;  %v1854_v26 = vpack.c.bf16 %v2458_v23, %v2454_v16 }
 0x110   : > { %v1309_v49 = vadd.f32 %v1308_v47, %v1246_v45  ;;  %v1983_v50 = vpop.f32.mrb[16].mxu0  ;;  %v1177_v51 = vadd.f32 %v1980_v34, %v1176_v46  ;;  %1918 = vst [vmem:[%s2400_s10 + $0xb8] sm:$0xff] %v1854_v26   ;;  %v1849_v34 = vpack.c.bf16 %v2462_v27, %v2456_v18 }
 0x111   : > { %v652_v53 = vpop.f32.mrb[17].mxu0  ;;  %v1250_v7 = vmul.f32 %v1983_v50, %v1983_v50 }
 0x112   : > { %v1178_v55 = vadd.f32 %v1177_v51, %v652_v53  ;;  %v1248_v56 = vmul.f32 %v652_v53, %v652_v53  ;;  %v1310_v57 = vadd.f32 %v1309_v49, %v1247_v48  ;;  %v1984_v58 = vpop.f32.mrb[18].mxu0  ;;  %1917 = vst [vmem:[%s2400_s10 + $0xb0] sm:$0xff] %v1849_v34   ;;  %v2470_v44 = vpop.f32.mrb[16].mxu1 }
 0x113   : > { %v1784_v60 = vpack.c.bf16 %v1984_v58, %v1983_v50  ;;  %v655_v61 = vpop.f32.mrb[19].mxu0  ;;  %v1251_v10 = vmul.f32 %v1984_v58, %v1984_v58  ;;  %v2472_v46 = vpop.f32.mrb[17].mxu1 }
 0x114   : > { %v1311_v0 = vadd.f32 %v1310_v57, %v1248_v56  ;;  %v1779_v1 = vpack.c.bf16 %v655_v61, %v652_v53  ;;  %v1179_v2 = vadd.f32 %v1178_v55, %v655_v61  ;;  %v1249_v3 = vmul.f32 %v655_v61, %v655_v61  ;;  %v2474_v51 = vpop.f32.mrb[18].mxu1 }
 0x115   : > { %1904 = vst [vmem:[%s2400_s10 + $0x48] sm:$0xff] %v1784_v60   ;;  %v1864_v56 = vpack.c.bf16 %v2474_v51, %v2470_v44  ;;  %v2478_v57 = vpop.f32.mrb[19].mxu1 }
 0x116   : > { %1903 = vst [vmem:[%s2400_s10 + $0x40] sm:$0xff] %v1779_v1   ;;  %v1180_v8 = vadd.f32 %v1983_v50, %v1179_v2  ;;  %v1312_v9 = vadd.f32 %v1311_v0, %v1249_v3  ;;  %v1859_v0 = vpack.c.bf16 %v2478_v57, %v2472_v46 }
 0x117   : > { %1920 = vst [vmem:[%s2400_s10 + $0xc8] sm:$0xff] %v1864_v56  }
 0x118   : > { %v1313_v12 = vadd.f32 %v1312_v9, %v1250_v7  ;;  %v1987_v13 = vpop.f32.mrb[20].mxu0  ;;  %v1181_v14 = vadd.f32 %v1984_v58, %v1180_v8  ;;  %1919 = vst [vmem:[%s2400_s10 + $0xc0] sm:$0xff] %v1859_v0  }
 0x119   : > { %v668_v17 = vpop.f32.mrb[21].mxu0  ;;  %v1254_v36 = vmul.f32 %v1987_v13, %v1987_v13 }
 0x11a   : > { %v1182_v19 = vadd.f32 %v1181_v14, %v668_v17  ;;  %v1252_v20 = vmul.f32 %v668_v17, %v668_v17  ;;  %v1314_v21 = vadd.f32 %v1313_v12, %v1251_v10  ;;  %v1988_v22 = vpop.f32.mrb[22].mxu0  ;;  %v2486_v10 = vpop.f32.mrb[20].mxu1 }
 0x11b   : > { %v1794_v24 = vpack.c.bf16 %v1988_v22, %v1987_v13  ;;  %v671_v25 = vpop.f32.mrb[23].mxu0  ;;  %v1255_v40 = vmul.f32 %v1988_v22, %v1988_v22 }
 0x11c   : > { %v1315_v29 = vadd.f32 %v1314_v21, %v1252_v20  ;;  %v1789_v31 = vpack.c.bf16 %v671_v25, %v668_v17  ;;  %v1183_v32 = vadd.f32 %v1182_v19, %v671_v25  ;;  %v1253_v33 = vmul.f32 %v671_v25, %v671_v25 }
 0x11d   : > { %1906 = vst [vmem:[%s2400_s10 + $0x58] sm:$0xff] %v1794_v24  }
 0x11e   : > { %1905 = vst [vmem:[%s2400_s10 + $0x50] sm:$0xff] %v1789_v31   ;;  %v1184_v37 = vadd.f32 %v1987_v13, %v1183_v32  ;;  %v1316_v38 = vadd.f32 %v1315_v29, %v1253_v33  ;;  %v2488_v13 = vpop.f32.mrb[21].mxu1 }
 0x11f   : > { %v2490_v21 = vpop.f32.mrb[22].mxu1 }
 0x120   : > { %v1317_v41 = vadd.f32 %v1316_v38, %v1254_v36  ;;  %v1991_v42 = vpop.f32.mrb[24].mxu0  ;;  %v1185_v43 = vadd.f32 %v1988_v22, %v1184_v37  ;;  %v1874_v25 = vpack.c.bf16 %v2490_v21, %v2486_v10  ;;  %v2494_v26 = vpop.f32.mrb[23].mxu1 }
 0x121   : > { %v684_v45 = vpop.f32.mrb[25].mxu0  ;;  %v1258_v1 = vmul.f32 %v1991_v42, %v1991_v42  ;;  %v1869_v34 = vpack.c.bf16 %v2494_v26, %v2488_v13 }
 0x122   : > { %v1186_v47 = vadd.f32 %v1185_v43, %v684_v45  ;;  %v1256_v48 = vmul.f32 %v684_v45, %v684_v45  ;;  %v1318_v49 = vadd.f32 %v1317_v41, %v1255_v40  ;;  %v1992_v50 = vpop.f32.mrb[26].mxu0  ;;  %1922 = vst [vmem:[%s2400_s10 + $0xd8] sm:$0xff] %v1874_v25   ;;  %v1264_v43 = vmul.f32 %v2408_v6, %v2408_v6 }
 0x123   : > { %v1804_v53 = vpack.c.bf16 %v1992_v50, %v1991_v42  ;;  %v687_v55 = vpop.f32.mrb[27].mxu0  ;;  %v1259_v5 = vmul.f32 %v1992_v50, %v1992_v50  ;;  %1921 = vst [vmem:[%s2400_s10 + $0xd0] sm:$0xff] %v1869_v34  }
 0x124   : > { %v1319_v58 = vadd.f32 %v1318_v49, %v1256_v48  ;;  %v1799_v60 = vpack.c.bf16 %v687_v55, %v684_v45  ;;  %v1187_v61 = vadd.f32 %v1186_v47, %v687_v55  ;;  %v1257_v62 = vmul.f32 %v687_v55, %v687_v55  ;;  %v2504_v45 = vpop.f32.mrb[24].mxu1 }
 0x125   : > { %1908 = vst [vmem:[%s2400_s10 + $0x68] sm:$0xff] %v1804_v53   ;;  %v2506_v47 = vpop.f32.mrb[25].mxu1 }
 0x126   : > { %1907 = vst [vmem:[%s2400_s10 + $0x60] sm:$0xff] %v1799_v60   ;;  %v1188_v2 = vadd.f32 %v1991_v42, %v1187_v61  ;;  %v1320_v3 = vadd.f32 %v1319_v58, %v1257_v62  ;;  %v1265_v60 = vmul.f32 %v2414_v15, %v2414_v15 }
 0x128   : > { %v1321_v7 = vadd.f32 %v1320_v3, %v1258_v1  ;;  %v1995_v8 = vpop.f32.mrb[28].mxu0  ;;  %v1189_v9 = vadd.f32 %v1992_v50, %v1188_v2  ;;  %v2509_v50 = vpop.f32.mrb[26].mxu1  ;;  %v1267_v1 = vmul.f32 %v2410_v11, %v2410_v11 }
 0x129   : > { %v700_v12 = vpop.f32.mrb[29].mxu0  ;;  %v1262_v36 = vmul.f32 %v1995_v8, %v1995_v8  ;;  %v1884_v53 = vpack.c.bf16 %v2509_v50, %v2504_v45  ;;  %v2513_v55 = vpop.f32.mrb[27].mxu1 }
 0x12a   : > { %v1190_v14 = vadd.f32 %v1189_v9, %v700_v12  ;;  %v1260_v17 = vmul.f32 %v700_v12, %v700_v12  ;;  %v1322_v19 = vadd.f32 %v1321_v7, %v1259_v5  ;;  %v1996_v20 = vpop.f32.mrb[30].mxu0  ;;  %v1879_v61 = vpack.c.bf16 %v2513_v55, %v2506_v47  ;;  %v2530_v5 = vpop.f32.mrb[28].mxu1 }
 0x12b   : > { %v1814_v22 = vpack.c.bf16 %v1996_v20, %v1995_v8  ;;  %v703_v24 = vpop.f32.mrb[31].mxu0  ;;  %v1263_v40 = vmul.f32 %v1996_v20, %v1996_v20  ;;  %1924 = vst [vmem:[%s2400_s10 + $0xe8] sm:$0xff] %v1884_v53   ;;  %v2534_v7 = vpop.f32.mrb[29].mxu1 }
 0x12c   : > { %v1323_v29 = vadd.f32 %v1322_v19, %v1260_v17  ;;  %v1809_v31 = vpack.c.bf16 %v703_v24, %v700_v12  ;;  %v1191_v32 = vadd.f32 %v1190_v14, %v703_v24  ;;  %v1261_v33 = vmul.f32 %v703_v24, %v703_v24  ;;  %1923 = vst [vmem:[%s2400_s10 + $0xe0] sm:$0xff] %v1879_v61   ;;  %v2537_v9 = vpop.f32.mrb[30].mxu1 }
 0x12d   : > { %1910 = vst [vmem:[%s2400_s10 + $0x78] sm:$0xff] %v1814_v22   ;;  %v2541_v12 = vpop.f32.mrb[31].mxu1  ;;  %v1269_v17 = vmul.f32 %v2430_v39, %v2430_v39 }
 0x12e   : > { %1909 = vst [vmem:[%s2400_s10 + $0x70] sm:$0xff] %v1809_v31   ;;  %v1192_v37 = vadd.f32 %v1995_v8, %v1191_v32  ;;  %v1324_v38 = vadd.f32 %v1323_v29, %v1261_v33  ;;  %v1889_v19 = vpack.c.bf16 %v2541_v12, %v2534_v7 }
 0x130   : > { %v1325_v41 = vadd.f32 %v1324_v38, %v1262_v36  ;;  %v1193_v42 = vadd.f32 %v1996_v20, %v1192_v37  ;;  %v1270_v20 = vmul.f32 %v2422_v28, %v2422_v28  ;;  %1925 = vst [vmem:[%s2400_s10 + $0xf0] sm:$0xff] %v1889_v19  }
 0x132   : > { %v1194_v48 = vadd.f32 %v1193_v42, %v2408_v6  ;;  %v1326_v49 = vadd.f32 %v1325_v41, %v1263_v40  ;;  %v1266_v6 = vmul.f32 %v2406_v4, %v2406_v4 }
 0x134   : > { %v1327_v56 = vadd.f32 %v1326_v49, %v1264_v43  ;;  %v1195_v58 = vadd.f32 %v1194_v48, %v2414_v15  ;;  %v1268_v15 = vmul.f32 %v2424_v30, %v2424_v30 }
 0x136   : > { %v1196_v62 = vadd.f32 %v2406_v4, %v1195_v58  ;;  %v1328_v0 = vadd.f32 %v1327_v56, %v1265_v60 }
 0x138   : > { %v1329_v2 = vadd.f32 %v1328_v0, %v1266_v6  ;;  %v1197_v3 = vadd.f32 %v2410_v11, %v1196_v62  ;;  %v1894_v11 = vpack.c.bf16 %v2537_v9, %v2530_v5 }
 0x13a   : > { %v1198_v4 = vadd.f32 %v1197_v3, %v2424_v30  ;;  %v1330_v8 = vadd.f32 %v1329_v2, %v1267_v1  ;;  %1926 = vst [vmem:[%s2400_s10 + $0xf8] sm:$0xff] %v1894_v11  }
 0x13c   : > { %v1331_v30 = vadd.f32 %v1330_v8, %v1268_v15  ;;  %v1199_v14 = vadd.f32 %v1198_v4, %v2430_v39 }
 0x13e   : > { %v1200_v22 = vadd.f32 %v2422_v28, %v1199_v14  ;;  %v1332_v24 = vadd.f32 %v1331_v30, %v1269_v17 }
 0x13f   : > { %2142 = shalt.err (!%p2139_p5)
}
 0x140   : > { %s2143_s4 = scalar_lea.hbm %s2546_s23, 4096  ;;  %s2147_s7 = scalar_lea.hbm %s2714_s2, 16384 }
 0x141   : > { %p2144_p6 = scmp.ne.s32.totalorder %s2546_s23, %s2143_s4  ;;  %p2148_p10 = scmp.lt.u32.totalorder %s2546_s23, %s2714_s2 }
 0x142   : > { %p2149_p11 = scmp.lt.u32.totalorder %s2147_s7, %s2143_s4  ;;  %p2151_p13 = scmp.lt.u32.totalorder %s2143_s4, %s2546_s23 }
 0x143   : > { %p2145_p7 = pnand %p2144_p6, %p2305_p4 }
 0x144   : > { %p2150_p12 = por %p2149_p11, %p2148_p10 }
 0x145   : > { %p2146_p9 = pneg %p2145_p7 }
 0x146   : > { %p2152_p0 = por %p2151_p13, %p2150_p12 }
 0x148   : > { %p2153_p1 = pnand %p2152_p0, %p2146_p9 }
 0x14a   : > { %2156 = shalt.err (!%p2153_p1)
}
 0x14b   : > { %s2242_s11 = smov 64   ;;  %s2243_s19 = smov 4   ;;  %v1271_v28 = vmul.f32 %v2426_v35, %v2426_v35  ;;  %v1333_v39 = vadd.f32 %v1332_v24, %v1270_v20  ;;  %v1201_v25 = vadd.f32 %v2426_v35, %v1200_v22  ;;  %v1272_v29 = vmul.f32 %v2440_v54, %v2440_v54 }
 0x14c   : > { %2033 = dma.vmem_to_hbm [thread:$0]  (%p2305_p4), %s2548_s18, 4096, %s2546_s23, %s1371_s26, %s2242_s11, %s2242_s11, %s2243_s19   ;;  %v1273_v36 = vmul.f32 %v2446_v63, %v2446_v63  ;;  %v1274_v37 = vmul.f32 %v2438_v52, %v2438_v52  ;;  %v1275_v35 = vmul.f32 %v2442_v59, %v2442_v59  ;;  %v1277_v53 = vmul.f32 %v2462_v27, %v2462_v27 }
 0x14d   : > { %v1202_v31 = vadd.f32 %v1201_v25, %v2440_v54  ;;  %v1334_v32 = vadd.f32 %v1333_v39, %v1271_v28  ;;  %v1276_v54 = vmul.f32 %v2456_v18, %v2456_v18  ;;  %v1281_v1 = vmul.f32 %v2478_v57, %v2478_v57  ;;  %s1531_s18 = sshll.u32 %s2397_s8, 3  ;;  %s1668_s21 = sshll.u32 %s2231_s15, 7 }
 0x14e   : > { %v1285_v14 = vmul.f32 %v2494_v26, %v2494_v26  ;;  %v1289_v25 = vmul.f32 %v2513_v55, %v2513_v55  ;;  %vm1365_vm1 = vcmask 1040384   ;;  %s204_s23 = scalar_lea.vmem [#allocation4], %s1531_s18  ;;  %vm1367_vm2 = vcmask 1041408   ;;  %s2664_s29 = scalar_lea.hbm %s2715_s3, %s1668_s21 }
 0x14f   : > { %v1335_v33 = vadd.f32 %v1334_v32, %v1272_v29  ;;  %v1203_v34 = vadd.f32 %v1202_v31, %v2446_v63  ;;  %s1407_s26 = sshll.u32 %s204_s23, 4  ;;  %s1376_s30 = scalar_lea.sflag [#allocation5], %s2397_s8  ;;  %s2666_s26 = int_to_ptr.vmem [resolvable:$true] %s1407_s26 }
 0x150   : > { %s2157_s15 = scalar_lea.vmem %s2666_s26, 128  ;;  %s2244_s4 = smov [#allocation4]  }
 0x151   : > { %v1204_v38 = vadd.f32 %v2438_v52, %v1203_v34  ;;  %v1336_v40 = vadd.f32 %v1335_v33, %v1273_v36  ;;  %v1278_v52 = vmul.f32 %v2454_v16, %v2454_v16  ;;  %p2158_p2 = scmp.ne.s32.totalorder %s2666_s26, %s2157_s15  ;;  %s2161_s5 = sshll.u32 %s2244_s4, 4  ;;  %s2162_s5 = int_to_ptr.vmem [resolvable:$false] %s2161_s5 }
 0x152   : > { %s2163_s6 = scalar_lea.vmem %s2162_s5, 256  ;;  %p2164_p6 = scmp.lt.s32.totalorder %s2666_s26, %s2162_s5 }
 0x153   : > { %v1337_v41 = vadd.f32 %v1336_v40, %v1274_v37  ;;  %v1205_v42 = vadd.f32 %v2442_v59, %v1204_v38  ;;  %v1279_v59 = vmul.f32 %v2458_v23, %v2458_v23  ;;  %v1294_v38 = vmul.f32 %v2530_v5, %v2530_v5  ;;  %p2159_p3 = pnand %p2158_p2, %p2305_p4  ;;  %p2165_p7 = scmp.lt.s32.totalorder %s2163_s6, %s2157_s15 }
 0x155   : > { %v1206_v43 = vadd.f32 %v1205_v42, %v2456_v18  ;;  %v1338_v48 = vadd.f32 %v1337_v41, %v1275_v35  ;;  %v1280_v18 = vmul.f32 %v2472_v46, %v2472_v46  ;;  %p2160_p5 = pneg %p2159_p3  ;;  %p2166_p9 = por %p2165_p7, %p2164_p6 }
 0x157   : > { %v1339_v49 = vadd.f32 %v1338_v48, %v1276_v54  ;;  %v1207_v63 = vadd.f32 %v1206_v43, %v2462_v27  ;;  %p2167_p10 = pnand %p2166_p9, %p2160_p5 }
 0x159   : > { %v1208_v56 = vadd.f32 %v2454_v16, %v1207_v63  ;;  %v1340_v58 = vadd.f32 %v1339_v49, %v1277_v53  ;;  %v1282_v16 = vmul.f32 %v2470_v44, %v2470_v44 }
 0x15b   : > { %v1341_v60 = vadd.f32 %v1340_v58, %v1278_v52  ;;  %v1209_v61 = vadd.f32 %v2458_v23, %v1208_v56  ;;  %v1283_v23 = vmul.f32 %v2474_v51, %v2474_v51 }
 0x15d   : > { %v1210_v6 = vadd.f32 %v1209_v61, %v2472_v46  ;;  %v1342_v62 = vadd.f32 %v1341_v60, %v1279_v59  ;;  %v1284_v46 = vmul.f32 %v2488_v13, %v2488_v13 }
 0x15f   : > { %v1343_v0 = vadd.f32 %v1342_v62, %v1280_v18  ;;  %v1211_v27 = vadd.f32 %v1210_v6, %v2478_v57 }
 0x161   : > { %v1212_v2 = vadd.f32 %v2470_v44, %v1211_v27  ;;  %v1344_v3 = vadd.f32 %v1343_v0, %v1281_v1  ;;  %v1286_v44 = vmul.f32 %v2486_v10, %v2486_v10 }
 0x163   : > { %v1345_v15 = vadd.f32 %v1344_v3, %v1282_v16  ;;  %v1213_v4 = vadd.f32 %v2474_v51, %v1212_v2  ;;  %v1287_v51 = vmul.f32 %v2490_v21, %v2490_v21 }
 0x165   : > { %v1214_v8 = vadd.f32 %v1213_v4, %v2488_v13  ;;  %v1346_v11 = vadd.f32 %v1345_v15, %v1283_v23  ;;  %v1288_v13 = vmul.f32 %v2506_v47, %v2506_v47 }
 0x167   : > { %v1347_v30 = vadd.f32 %v1346_v11, %v1284_v46  ;;  %v1215_v57 = vadd.f32 %v1214_v8, %v2494_v26 }
 0x169   : > { %v1216_v17 = vadd.f32 %v2486_v10, %v1215_v57  ;;  %v1348_v19 = vadd.f32 %v1347_v30, %v1285_v14  ;;  %v1290_v10 = vmul.f32 %v2504_v45, %v2504_v45 }
 0x16b   : > { %v1349_v20 = vadd.f32 %v1348_v19, %v1286_v44  ;;  %v1217_v22 = vadd.f32 %v2490_v21, %v1216_v17  ;;  %v1291_v21 = vmul.f32 %v2509_v50, %v2509_v50 }
 0x16d   : > { %v1218_v24 = vadd.f32 %v1217_v22, %v2506_v47  ;;  %v1350_v28 = vadd.f32 %v1349_v20, %v1287_v51  ;;  %v1292_v47 = vmul.f32 %v2534_v7, %v2534_v7 }
 0x16f   : > { %v1351_v39 = vadd.f32 %v1350_v28, %v1288_v13  ;;  %v1219_v26 = vadd.f32 %v1218_v24, %v2513_v55 }
 0x171   : > { %v1220_v29 = vadd.f32 %v2504_v45, %v1219_v26  ;;  %v1352_v31 = vadd.f32 %v1351_v39, %v1289_v25  ;;  %v1293_v45 = vmul.f32 %v2541_v12, %v2541_v12 }
 0x173   : > { %v1353_v32 = vadd.f32 %v1352_v31, %v1290_v10  ;;  %v1221_v33 = vadd.f32 %v2509_v50, %v1220_v29  ;;  %v1295_v50 = vmul.f32 %v2537_v9, %v2537_v9 }
 0x175   : > { %v1222_v34 = vadd.f32 %v1221_v33, %v2534_v7  ;;  %v1354_v36 = vadd.f32 %v1353_v32, %v1291_v21 }
 0x177   : > { %v1355_v55 = vadd.f32 %v1354_v36, %v1292_v47  ;;  %v1223_v37 = vadd.f32 %v1222_v34, %v2541_v12 }
 0x179   : > { %v1224_v40 = vadd.f32 %v2530_v5, %v1223_v37  ;;  %v1356_v35 = vadd.f32 %v1355_v55, %v1293_v45 }
 0x17b   : > { %v1225_v7 = vadd.f32 %v2537_v9, %v1224_v40  ;;  %v1357_v41 = vadd.f32 %v1356_v35, %v1294_v38 }
 0x17d   : > { %v1226_v42 = vrot.slane %v1225_v7, 4  ;;  %v1358_v54 = vadd.f32 %v1357_v41, %v1295_v50 }
 0x17f   : > { %v1227_v43 = vadd.f32 %v1226_v42, %v1225_v7  ;;  %v1359_v48 = vrot.slane %v1358_v54, 4 }
 0x181   : > { %v1228_v49 = vrot.slane %v1227_v43, 2  ;;  %v1360_v63 = vadd.f32 %v1359_v48, %v1358_v54 }
 0x183   : > { %v1229_v12 = vadd.f32 %v1228_v49, %v1227_v43  ;;  %v1361_v53 = vrot.slane %v1360_v63, 2 }
 0x185   : > { %v1230_v52 = vrot.slane %v1229_v12, 1  ;;  %v1362_v5 = vadd.f32 %v1361_v53, %v1360_v63 }
 0x187   : > { %v1363_v56 = vrot.slane %v1362_v5, 1  ;;  %v1231_v9 = vadd.f32 %v1230_v52, %v1229_v12 }
 0x189   : > { %v1364_v58 = vadd.f32 %v1363_v56, %v1362_v5 }
 0x18b   : > { %v1366_v59 = vsel %vm1365_vm1, %v1231_v9, %v1364_v58 }
 0x18c   : > { %v1368_v60 = vsel %vm1367_vm2, %v1366_v59, 0.0 }
 0x18d   : > { %1369 = vst [vmem:[%s204_s23] sm:$0xff] %v1368_v60 }
 0x18e   : > { %2170 = shalt.err (!%p2167_p10)
}
 0x18f   : > { %s2171_s8 = scalar_lea.hbm %s2664_s29, 128  ;;  %s2175_s10 = scalar_lea.hbm %s2715_s3, 512 }
 0x190   : > { %p2172_p11 = scmp.ne.s32.totalorder %s2664_s29, %s2171_s8  ;;  %p2176_p0 = scmp.lt.u32.totalorder %s2664_s29, %s2715_s3 }
 0x191   : > { %p2177_p1 = scmp.lt.u32.totalorder %s2175_s10, %s2171_s8  ;;  %p2179_p3 = scmp.lt.u32.totalorder %s2171_s8, %s2664_s29 }
 0x192   : > { %p2173_p12 = pnand %p2172_p11, %p2305_p4 }
 0x193   : > { %p2178_p2 = por %p2177_p1, %p2176_p0 }
 0x194   : > { %p2174_p13 = pneg %p2173_p12 }
 0x195   : > { %p2180_p5 = por %p2179_p3, %p2178_p2 }
 0x197   : > { %p2181_p6 = pnand %p2180_p5, %p2174_p13 }
 0x199   : > { %2184 = shalt.err (!%p2181_p6)
}
 0x19a   : > { %2034 = dma.vmem_to_hbm [thread:$0]  (%p2305_p4), %s2666_s26, 128, %s2664_s29, %s1376_s30  }
 0x19b PF: > { %p2044_p7 = scmp.ge.s32.totalorder %s2239_s17, 2  ;;  %s1419_s18 = sand.u32 1, %s2219_s12  }
 0x19c   : > { %s1420_s21 = scalar_lea.sflag [#allocation3], %s1419_s18 }
 0x19d   : > { %p2038_p9 = pnand %p2044_p7, %p2312_p8 }
 0x19f   : > { %2210 = dma.done.wait (!%p2038_p9), %s1420_s21, 4096  }
 0x1a0   : > { %2212 = vsyncadd (!%p2038_p9), %s1420_s21, 4294963200  ;;  %s1429_s23 = scalar_lea.sflag [#allocation5], %s1419_s18 }
 0x1a1   : > { %2214 = dma.done.wait (!%p2038_p9), %s1429_s23, 128  }
 0x1a2   : > { %2216 = vsyncadd (!%p2038_p9), %s1429_s23, 4294967168  ;;  %s20_s17 = sadd.s32 1, %s2239_s17   ;;  %s2718_s12 = smov %s2223_s13 }
 0x1a3   : > { %p17_p10 = scmp.ge.s32.totalorder %s20_s17, 6   ;;  %s2719_s13 = smov %s2227_s14 }
 0x1a4   : > { %s2720_s14 = smov %s2318_s25  ;;  %s2721_s15 = smov %s2235_s16 }
 0x1a5   : > { %s2722_s16 = smov %s2724_s20  ;;  %19 = sbr.rel (!%p17_p10) target bundleno = 6 (0x6), region = 83 }
 0x1ac   :  { %1434 = vsyncpa [#allocation3], 1 }
 0x1ad   :  { %1436 = vsyncpa [#allocation3 + $0x1], 1 }
 0x1ae   :  { %1437 = vsyncpa [#allocation5], 1 }
 0x1af   :  { %1439 = vsyncpa [#allocation5 + $0x1], 1 }

</bundles_post_ra>
